<compile_context>
chip_gen: v7x
topology: tpu7x:2x2x1
jax: 0.10.0
libtpu: 0.0.40
codegen_flags: <defaults>
</compile_context>

<pallas_src>
import functools

import jax
import jax.numpy as jnp
from jax import lax
from jax.experimental import pallas as pl
from jax.experimental.pallas import tpu as pltpu


def _round_up(x, m):
    return ((x + m - 1) // m) * m


def _largest_divisor_leq(n, k):
    for d in range(min(n, k), 0, -1):
        if n % d == 0:
            return d
    return 1


def _vmem_capacity_bytes():
    """Physical VMEM of the current chip; conservative fallback (v7x) if unknown."""
    try:
        cap = int(getattr(pltpu.get_tpu_info(), "vmem_capacity_bytes", 0))
        if cap > 0:
            return cap
    except Exception:
        pass
    return 64 * 2**20


# ----------------------------------------------------------------------------
# Pallas kernel: one (batch-block, time-tile) step of the full residual block
# ----------------------------------------------------------------------------
def _temporal_block_kernel(
    x_ref,      # (Bblk, Cin,  TL)   input tile, NCL layout (time in lanes), f32
    w1_ref,     # (Cout, K*Cin)      conv1 weights, im2col layout, bf16
    b1_ref,     # (Cout, 1)          f32
    w2_ref,     # (Cout, K*Cout)     conv2 weights, im2col layout, bf16
    b2_ref,     # (Cout, 1)          f32
    *rest,      # [wd_ref, bd_ref,] out_ref, xwin_ref, hwin_ref
    dilation: int,
    kernel_size: int,
    pad_len: int,
    multi_tile: bool,
    has_downsample: bool,
):
    if has_downsample:
        wd_ref, bd_ref, out_ref, xwin_ref, hwin_ref = rest
    else:
        out_ref, xwin_ref, hwin_ref = rest
        wd_ref = bd_ref = None

    K, d, pad = kernel_size, dilation, pad_len
    Bblk, Cin, TL = x_ref.shape
    Cout = out_ref.shape[1]
    t = pl.program_id(1)

    # ---- reset the causal-halo region at the first time tile of a batch ----
    if pad > 0:
        @pl.when(t == 0)
        def _init_halo():
            xwin_ref[...] = jnp.zeros_like(xwin_ref)
            hwin_ref[...] = jnp.zeros_like(hwin_ref)

    w1 = w1_ref[...]
    bias1 = b1_ref[...]
    w2 = w2_ref[...]
    bias2 = b2_ref[...]
    if has_downsample:
        wd = wd_ref[...]
        biasd = bd_ref[...]

    for b in range(Bblk):                       # static unroll over batch block
        x_f32 = x_ref[b]                        # (Cin, TL) f32
        x_bf = x_f32.astype(jnp.bfloat16)

        # ---- conv1: K dilated taps fused into a single bf16 MXU matmul -----
        # persistent window: [halo (pad) | current tile (TL)], bf16
        xwin_ref[b, :, pad:] = x_bf
        if K > 1:
            im1 = jnp.concatenate(
                [xwin_ref[b, :, k * d: k * d + TL] for k in range(K)], axis=0)
        else:
            im1 = x_bf                          # (K*Cin, TL)
        h1 = jnp.dot(w1, im1, preferred_element_type=jnp.float32)
        h1 = jnp.maximum(h1 + bias1, 0.0)       # (Cout, TL) f32
        # dropout1: identity (eval mode)

        # ---- conv2: consumes h1 via its own persistent bf16 window ---------
        h1_bf = h1.astype(jnp.bfloat16)
        hwin_ref[b, :, pad:] = h1_bf
        if K > 1:
            im2 = jnp.concatenate(
                [hwin_ref[b, :, k * d: k * d + TL] for k in range(K)], axis=0)
        else:
            im2 = h1_bf                         # (K*Cout, TL)
        h2 = jnp.dot(w2, im2, preferred_element_type=jnp.float32)
        h2 = jnp.maximum(h2 + bias2, 0.0)       # (Cout, TL) f32
        # dropout2: identity (eval mode)

        # ---- residual + final ReLU ------------------------------------------
        if has_downsample:
            res = jnp.dot(wd, x_bf, preferred_element_type=jnp.float32) + biasd
        else:
            res = x_f32                         # exact f32 identity residual
        out_ref[b] = jnp.maximum(h2 + res, 0.0).astype(out_ref.dtype)

        # ---- carry the last `pad` timesteps forward (bf16, in-window) -------
        if multi_tile and pad > 0:
            xwin_ref[b, :, :pad] = xwin_ref[b, :, TL:TL + pad]
            hwin_ref[b, :, :pad] = hwin_ref[b, :, TL:TL + pad]


# ----------------------------------------------------------------------------
# Wrapper: PyTorch NCL in / NCL out
# ----------------------------------------------------------------------------
def _plan_tiles(L, pad, Cin, Cout, K, batch_block, has_downsample, time_tile):
    """Choose a VMEM-aware, generation-aware time tile (multiple of 128)."""
    cap = _vmem_capacity_bytes()
    usable = min(cap // 2, 64 * 2**20)          # ~half of physical, <= 64 MiB

    # fixed operands (bf16 weights, double-buffered by the pipeline) + slack
    fixed = 4 * (Cout * K * (Cin + Cout)
                 + (Cout * Cin if has_downsample else 0)) + (1 << 20)
    # per-timestep VMEM bytes of a tile (in/out double-buffered f32, bf16
    # windows, bf16 im2col temps, f32 intermediates)
    per_tl = batch_block * (
        8 * Cin + 8 * Cout
        + 2 * (Cin + Cout)
        + 2 * K * (Cin + Cout)
        + 8 * Cout + 4 * Cin)

    if time_tile is not None:
        tl = _round_up(int(time_tile), 128)
    else:
        avail = max(usable - fixed, 128 * per_tl)
        tl = max(128, (avail // per_tl) // 128 * 128)
        tl = min(tl, 8192)

    tl = min(tl, _round_up(L, 128))
    if _round_up(L, 128) > tl and tl < pad:     # tile must cover the halo
        tl = _round_up(pad, 128)

    Lp = _round_up(L, tl)
    num_t = Lp // tl
    if num_t > 1:
        assert tl >= pad, "time tile must cover the causal halo"

    vmem_limit = int(min(max(32 * 2**20, 2 * (fixed + per_tl * tl) + (8 << 20)),
                         cap - (1 << 20)))
    return tl, Lp, num_t, vmem_limit


def temporal_block_pallas(x_ncl, params, *, kernel_size, dilation, padding,
                          time_tile=None, batch_block=1):
    """x_ncl: (B, Cin, L) float32.  Returns (B, Cout, L) float32."""
    B, Cin, L = x_ncl.shape
    K = kernel_size
    # TODO(synk): only the standard causal-TCN case padding == dilation*(K-1)
    # is implemented (output length == input length after chomp).
    assert padding == dilation * (K - 1)

    w1, b1 = params["w1"], params["b1"]          # (Cout, Cin, K), (Cout,)
    w2, b2 = params["w2"], params["b2"]          # (Cout, Cout, K), (Cout,)
    Cout = w1.shape[0]
    wd = params.get("wd")                        # (Cout, Cin) or None
    bd = params.get("bd")
    has_downsample = wd is not None
    if not has_downsample:
        assert Cin == Cout, "identity residual requires Cin == Cout"

    if batch_block is None:
        batch_block = 1
    batch_block = _largest_divisor_leq(B, max(1, int(batch_block)))
    num_b = B // batch_block

    TL, Lp, num_t, vmem_limit = _plan_tiles(
        L, padding, Cin, Cout, K, batch_block, has_downsample, time_tile)

    x_p = x_ncl if Lp == L else jnp.pad(x_ncl, ((0, 0), (0, 0), (0, Lp - L)))

    # Fold the K taps into the contraction dim (im2col index = k*C + c), bf16.
    w1_mat = jnp.transpose(w1, (0, 2, 1)).reshape(Cout, K * Cin).astype(jnp.bfloat16)
    w2_mat = jnp.transpose(w2, (0, 2, 1)).reshape(Cout, K * Cout).astype(jnp.bfloat16)
    b1_c = b1.reshape(Cout, 1).astype(jnp.float32)
    b2_c = b2.reshape(Cout, 1).astype(jnp.float32)

    kernel = functools.partial(
        _temporal_block_kernel, dilation=dilation, kernel_size=K,
        pad_len=padding, multi_tile=num_t > 1, has_downsample=has_downsample)

    inputs = [x_p, w1_mat, b1_c, w2_mat, b2_c]
    in_specs = [
        pl.BlockSpec((batch_block, Cin, TL), lambda b, t: (b, 0, t)),   # x tile
        pl.BlockSpec((Cout, K * Cin), lambda b, t: (0, 0)),             # w1
        pl.BlockSpec((Cout, 1), lambda b, t: (0, 0)),                   # b1
        pl.BlockSpec((Cout, K * Cout), lambda b, t: (0, 0)),            # w2
        pl.BlockSpec((Cout, 1), lambda b, t: (0, 0)),                   # b2
    ]
    if has_downsample:
        wd_mat = wd.astype(jnp.bfloat16)
        bd_c = bd.reshape(Cout, 1).astype(jnp.float32)
        inputs += [wd_mat, bd_c]
        in_specs += [
            pl.BlockSpec((Cout, Cin), lambda b, t: (0, 0)),             # wd
            pl.BlockSpec((Cout, 1), lambda b, t: (0, 0)),               # bd
        ]

    flops = 2 * B * Lp * (K * Cin * Cout + K * Cout * Cout
                          + (Cin * Cout if has_downsample else 0))
    bytes_accessed = (4 * B * Lp * (Cin + Cout)
                      + 2 * Cout * (K * Cin + K * Cout
                                    + (Cin if has_downsample else 0))
                      + 4 * 3 * Cout)
    cost = pl.CostEstimate(flops=int(flops), transcendentals=0,
                           bytes_accessed=int(bytes_accessed))

    out = pl.pallas_call(
        kernel,
        out_shape=jax.ShapeDtypeStruct((B, Cout, Lp), jnp.float32),
        grid=(num_b, num_t),
        in_specs=in_specs,
        out_specs=pl.BlockSpec((batch_block, Cout, TL), lambda b, t: (b, 0, t)),
        scratch_shapes=[
            # persistent bf16 causal windows: [halo (pad) | tile (TL)]
            pltpu.VMEM((batch_block, Cin, padding + TL), jnp.bfloat16),
            pltpu.VMEM((batch_block, Cout, padding + TL), jnp.bfloat16),
        ],
        compiler_params=pltpu.CompilerParams(
            dimension_semantics=("parallel", "arbitrary"),
            vmem_limit_bytes=vmem_limit),
        cost_estimate=cost,
    )(*inputs)
    if Lp != L:
        out = out[:, :, :L]
    return out


# ----------------------------------------------------------------------------
# Pure-JAX reference (mirrors the PyTorch module exactly, NCL layout)
# ----------------------------------------------------------------------------
def temporal_block_ref(x_ncl, params, *, kernel_size, dilation, padding):
    w1, b1 = params["w1"], params["b1"]
    w2, b2 = params["w2"], params["b2"]
    dn = ("NCH", "OIH", "NCH")

    y = lax.conv_general_dilated(
        x_ncl, w1, window_strides=(1,), padding=[(padding, padding)],
        rhs_dilation=(dilation,), dimension_numbers=dn) + b1[None, :, None]
    y = y[:, :, :-padding]                      # chomp1
    y = jnp.maximum(y, 0.0)                     # relu1 (dropout1 = identity)

    y = lax.conv_general_dilated(
        y, w2, window_strides=(1,), padding=[(padding, padding)],
        rhs_dilation=(dilation,), dimension_numbers=dn) + b2[None, :, None]
    y = y[:, :, :-padding]                      # chomp2
    y = jnp.maximum(y, 0.0)                     # relu2 (dropout2 = identity)

    wd = params.get("wd")
    if wd is None:                              # downsample = None (Cin == Cout)
        res = x_ncl
    else:
        res = lax.conv_general_dilated(
            x_ncl, wd[:, :, None], window_strides=(1,), padding=[(0, 0)],
            dimension_numbers=dn) + params["bd"][None, :, None]
    return jnp.maximum(y + res, 0.0)


# ----------------------------------------------------------------------------
# Parameter setup (deterministic; weight_norm folded to effective weights)
# ----------------------------------------------------------------------------
def _weight_norm(v, g):
    # PyTorch weight_norm default dim=0: per-output-channel norm over (in, k)
    norm = jnp.sqrt(jnp.sum(v * v, axis=(1, 2), keepdims=True))
    return g[:, None, None] * v / norm


def make_params(key, n_inputs, n_outputs, kernel_size, with_downsample=True):
    ks = jax.random.split(key, 8)
    v1 = jax.random.uniform(ks[0], (n_outputs, n_inputs, kernel_size),
                            jnp.float32, -0.1, 0.1)
    g1 = jax.random.uniform(ks[1], (n_outputs,), jnp.float32, 0.5, 1.5)
    b1 = jax.random.uniform(ks[2], (n_outputs,), jnp.float32, -0.1, 0.1)
    v2 = jax.random.uniform(ks[3], (n_outputs, n_outputs, kernel_size),
                            jnp.float32, -0.1, 0.1)
    g2 = jax.random.uniform(ks[4], (n_outputs,), jnp.float32, 0.5, 1.5)
    b2 = jax.random.uniform(ks[5], (n_outputs,), jnp.float32, -0.1, 0.1)
    p = {"w1": _weight_norm(v1, g1), "b1": b1,
         "w2": _weight_norm(v2, g2), "b2": b2}
    if with_downsample:
        p["wd"] = 0.01 * jax.random.normal(ks[6], (n_outputs, n_inputs), jnp.float32)
        p["bd"] = jax.random.uniform(ks[7], (n_outputs,), jnp.float32, -0.1, 0.1)
    return p


if __name__ == "__main__":
    key = jax.random.PRNGKey(0)
    kx1, kp1, kx2, kp2, kx3 = jax.random.split(key, 5)

    # bf16 MXU matmuls with f32 accumulation -> slightly relaxed tolerance
    ATOL = RTOL = 5e-2

    # Case 1: Cin != Cout (1x1 downsample residual); exercise both the
    # auto (single-tile) path and a forced multi-time-tile (halo carry) path.
    B, Cin, Cout, L = 2, 4, 8, 256
    K, dil = 3, 2
    pad = dil * (K - 1)
    x = jax.random.normal(kx1, (B, Cin, L), jnp.float32)
    params = make_params(kp1, Cin, Cout, K)
    ref = temporal_block_ref(x, params, kernel_size=K, dilation=dil, padding=pad)
    for tt in (None, 128):
        out = temporal_block_pallas(x, params, kernel_size=K, dilation=dil,
                                    padding=pad, time_tile=tt)
        out = jax.block_until_ready(out)
        assert out.shape == (B, Cout, L)
        err = float(jnp.max(jnp.abs(out - ref)))
        assert jnp.allclose(out, ref, atol=ATOL, rtol=RTOL), \
            f"case1 time_tile={tt} max err {err}"

    # Case 2: Cin == Cout (downsample is None -> exact identity residual).
    B2, C2, L2 = 2, 8, 128
    K2, dil2 = 3, 1
    pad2 = dil2 * (K2 - 1)
    x2 = jax.random.normal(kx2, (B2, C2, L2), jnp.float32)
    params2 = make_params(kp2, C2, C2, K2, with_downsample=False)
    out2 = jax.block_until_ready(
        temporal_block_pallas(x2, params2, kernel_size=K2, dilation=dil2,
                              padding=pad2))
    ref2 = temporal_block_ref(x2, params2, kernel_size=K2, dilation=dil2,
                              padding=pad2)
    err2 = float(jnp.max(jnp.abs(out2 - ref2)))
    assert jnp.allclose(out2, ref2, atol=ATOL, rtol=RTOL), f"case2 max err {err2}"

    # Case 3: batch-blocked tiles (Bblk=2), multi-tile time axis, and a
    # sequence length that is not a multiple of the tile (exercises L padding).
    B3, L3 = 4, 200
    x3 = jax.random.normal(kx3, (B3, Cin, L3), jnp.float32)
    ref3 = temporal_block_ref(x3, params, kernel_size=K, dilation=dil, padding=pad)
    out3 = jax.block_until_ready(
        temporal_block_pallas(x3, params, kernel_size=K, dilation=dil,
                              padding=pad, time_tile=128, batch_block=2))
    assert out3.shape == (B3, Cout, L3)
    err3 = float(jnp.max(jnp.abs(out3 - ref3)))
    assert jnp.allclose(out3, ref3, atol=ATOL, rtol=RTOL), f"case3 max err {err3}"

    print("KERNEL_OK")
</pallas_src>

<mosaic_0001>
module attributes {stable_mosaic.version = 11 : i64} {
  func.func @_temporal_block_kernel(%arg0: i32, %arg1: i32, %arg2: memref<1x4x256xf32, #tpu.memory_space<vmem>>, %arg3: memref<8x12xbf16, #tpu.memory_space<vmem>>, %arg4: memref<8x1xf32, #tpu.memory_space<vmem>>, %arg5: memref<8x24xbf16, #tpu.memory_space<vmem>>, %arg6: memref<8x1xf32, #tpu.memory_space<vmem>>, %arg7: memref<8x4xbf16, #tpu.memory_space<vmem>>, %arg8: memref<8x1xf32, #tpu.memory_space<vmem>>, %arg9: memref<1x8x256xf32, #tpu.memory_space<vmem>>, %arg10: memref<1x4x260xbf16, #tpu.memory_space<vmem>>, %arg11: memref<1x8x260xbf16, #tpu.memory_space<vmem>>) attributes {dimension_semantics = [#tpu.dimension_semantics<parallel>, #tpu.dimension_semantics<arbitrary>], iteration_bounds = array<i64: 2, 1>, scalar_prefetch = 0 : i64, scratch_operands = 2 : i64, tpu.core_type = #tpu.core_type<tc>, window_params = [{transform_indices = @transform_0, window_bounds = array<i64: 1, 4, 256>}, {pipeline_mode = #tpu.pipeline_mode<synchronous>, transform_indices = @transform_1, window_bounds = array<i64: 8, 12>}, {pipeline_mode = #tpu.pipeline_mode<synchronous>, transform_indices = @transform_2, window_bounds = array<i64: 8, 1>}, {pipeline_mode = #tpu.pipeline_mode<synchronous>, transform_indices = @transform_3, window_bounds = array<i64: 8, 24>}, {pipeline_mode = #tpu.pipeline_mode<synchronous>, transform_indices = @transform_4, window_bounds = array<i64: 8, 1>}, {pipeline_mode = #tpu.pipeline_mode<synchronous>, transform_indices = @transform_5, window_bounds = array<i64: 8, 4>}, {pipeline_mode = #tpu.pipeline_mode<synchronous>, transform_indices = @transform_6, window_bounds = array<i64: 8, 1>}, {transform_indices = @transform_7, window_bounds = array<i64: 1, 8, 256>}]} {
    %c0_i32 = arith.constant 0 : i32
    %0 = arith.cmpi eq, %arg1, %c0_i32 : i32
    %1 = arith.extui %0 : i1 to i32
    %c0_i32_0 = arith.constant 0 : i32
    %2 = arith.cmpi ne, %1, %c0_i32_0 : i32
    scf.if %2 {
      %cst_45 = arith.constant 0.000000e+00 : bf16
      %52 = vector.broadcast %cst_45 : bf16 to vector<1x4x260xbf16>
      %c0_46 = arith.constant 0 : index
      %c0_47 = arith.constant 0 : index
      %c0_48 = arith.constant 0 : index
      %53 = vector.load %arg10[%c0_46, %c0_47, %c0_48] : memref<1x4x260xbf16, #tpu.memory_space<vmem>>, vector<1x4x260xbf16>
      tpu.vector_store %arg10[%c0_46, %c0_47, %c0_48], %52 {strides = array<i32>} : memref<1x4x260xbf16, #tpu.memory_space<vmem>>, vector<1x4x260xbf16>,
      %cst_49 = arith.constant 0.000000e+00 : bf16
      %54 = vector.broadcast %cst_49 : bf16 to vector<1x8x260xbf16>
      %c0_50 = arith.constant 0 : index
      %c0_51 = arith.constant 0 : index
      %c0_52 = arith.constant 0 : index
      %55 = vector.load %arg11[%c0_50, %c0_51, %c0_52] : memref<1x8x260xbf16, #tpu.memory_space<vmem>>, vector<1x8x260xbf16>
      tpu.vector_store %arg11[%c0_50, %c0_51, %c0_52], %54 {strides = array<i32>} : memref<1x8x260xbf16, #tpu.memory_space<vmem>>, vector<1x8x260xbf16>,
    } else {
    }
    %c0 = arith.constant 0 : index
    %c0_1 = arith.constant 0 : index
    %3 = vector.load %arg3[%c0, %c0_1] : memref<8x12xbf16, #tpu.memory_space<vmem>>, vector<8x12xbf16>
    %c0_2 = arith.constant 0 : index
    %c0_3 = arith.constant 0 : index
    %4 = vector.load %arg4[%c0_2, %c0_3] : memref<8x1xf32, #tpu.memory_space<vmem>>, vector<8x1xf32>
    %c0_4 = arith.constant 0 : index
    %c0_5 = arith.constant 0 : index
    %5 = vector.load %arg5[%c0_4, %c0_5] : memref<8x24xbf16, #tpu.memory_space<vmem>>, vector<8x24xbf16>
    %c0_6 = arith.constant 0 : index
    %c0_7 = arith.constant 0 : index
    %6 = vector.load %arg6[%c0_6, %c0_7] : memref<8x1xf32, #tpu.memory_space<vmem>>, vector<8x1xf32>
    %c0_8 = arith.constant 0 : index
    %c0_9 = arith.constant 0 : index
    %7 = vector.load %arg7[%c0_8, %c0_9] : memref<8x4xbf16, #tpu.memory_space<vmem>>, vector<8x4xbf16>
    %c0_10 = arith.constant 0 : index
    %c0_11 = arith.constant 0 : index
    %8 = vector.load %arg8[%c0_10, %c0_11] : memref<8x1xf32, #tpu.memory_space<vmem>>, vector<8x1xf32>
    %c0_12 = arith.constant 0 : index
    %c0_13 = arith.constant 0 : index
    %c0_14 = arith.constant 0 : index
    %9 = vector.load %arg2[%c0_12, %c0_13, %c0_14] : memref<1x4x256xf32, #tpu.memory_space<vmem>>, vector<1x4x256xf32>
    %10 = vector.shape_cast %9 : vector<1x4x256xf32> to vector<4x256xf32>
    %11 = arith.truncf %10 : vector<4x256xf32> to vector<4x256xbf16>
    %c0_15 = arith.constant 0 : index
    %c0_16 = arith.constant 0 : index
    %c4 = arith.constant 4 : index
    %12 = vector.load %arg10[%c0_15, %c0_16, %c4] : memref<1x4x260xbf16, #tpu.memory_space<vmem>>, vector<1x4x256xbf16>
    %13 = vector.shape_cast %12 : vector<1x4x256xbf16> to vector<4x256xbf16>
    %14 = vector.shape_cast %11 : vector<4x256xbf16> to vector<1x4x256xbf16>
    tpu.vector_store %arg10[%c0_15, %c0_16, %c4], %14 {strides = array<i32>} : memref<1x4x260xbf16, #tpu.memory_space<vmem>>, vector<1x4x256xbf16>,
    %c0_17 = arith.constant 0 : index
    %c0_18 = arith.constant 0 : index
    %c0_19 = arith.constant 0 : index
    %15 = vector.load %arg10[%c0_17, %c0_18, %c0_19] : memref<1x4x260xbf16, #tpu.memory_space<vmem>>, vector<1x4x256xbf16>
    %16 = vector.shape_cast %15 : vector<1x4x256xbf16> to vector<4x256xbf16>
    %c0_20 = arith.constant 0 : index
    %c0_21 = arith.constant 0 : index
    %c2 = arith.constant 2 : index
    %17 = vector.load %arg10[%c0_20, %c0_21, %c2] : memref<1x4x260xbf16, #tpu.memory_space<vmem>>, vector<1x4x256xbf16>
    %18 = vector.shape_cast %17 : vector<1x4x256xbf16> to vector<4x256xbf16>
    %c0_22 = arith.constant 0 : index
    %c0_23 = arith.constant 0 : index
    %c4_24 = arith.constant 4 : index
    %19 = vector.load %arg10[%c0_22, %c0_23, %c4_24] : memref<1x4x260xbf16, #tpu.memory_space<vmem>>, vector<1x4x256xbf16>
    %20 = vector.shape_cast %19 : vector<1x4x256xbf16> to vector<4x256xbf16>
    %21 = tpu.concatenate %16, %18, %20 in 0 : vector<4x256xbf16>, vector<4x256xbf16>, vector<4x256xbf16> -> vector<12x256xbf16>
    %cst = arith.constant dense<0.000000e+00> : vector<8x256xf32>
    %22 = tpu.matmul %3, %21, %cst {dimension_numbers = #tpu.dot_dimension_numbers<[1], [0], [0], [1], [0, 0, 1, 1], [], []>} : vector<8x12xbf16>, vector<12x256xbf16>, vector<8x256xf32> -> vector<8x256xf32>
    %23 = vector.broadcast %4 : vector<8x1xf32> to vector<8x256xf32>
    %24 = arith.addf %22, %23 : vector<8x256xf32>
    %cst_25 = arith.constant 0.000000e+00 : f32
    %25 = vector.broadcast %cst_25 : f32 to vector<8x256xf32>
    %26 = arith.maximumf %24, %25 : vector<8x256xf32>
    %27 = arith.truncf %26 : vector<8x256xf32> to vector<8x256xbf16>
    %c0_26 = arith.constant 0 : index
    %c0_27 = arith.constant 0 : index
    %c4_28 = arith.constant 4 : index
    %28 = vector.load %arg11[%c0_26, %c0_27, %c4_28] : memref<1x8x260xbf16, #tpu.memory_space<vmem>>, vector<1x8x256xbf16>
    %29 = vector.shape_cast %28 : vector<1x8x256xbf16> to vector<8x256xbf16>
    %30 = vector.shape_cast %27 : vector<8x256xbf16> to vector<1x8x256xbf16>
    tpu.vector_store %arg11[%c0_26, %c0_27, %c4_28], %30 {strides = array<i32>} : memref<1x8x260xbf16, #tpu.memory_space<vmem>>, vector<1x8x256xbf16>,
    %c0_29 = arith.constant 0 : index
    %c0_30 = arith.constant 0 : index
    %c0_31 = arith.constant 0 : index
    %31 = vector.load %arg11[%c0_29, %c0_30, %c0_31] : memref<1x8x260xbf16, #tpu.memory_space<vmem>>, vector<1x8x256xbf16>
    %32 = vector.shape_cast %31 : vector<1x8x256xbf16> to vector<8x256xbf16>
    %c0_32 = arith.constant 0 : index
    %c0_33 = arith.constant 0 : index
    %c2_34 = arith.constant 2 : index
    %33 = vector.load %arg11[%c0_32, %c0_33, %c2_34] : memref<1x8x260xbf16, #tpu.memory_space<vmem>>, vector<1x8x256xbf16>
    %34 = vector.shape_cast %33 : vector<1x8x256xbf16> to vector<8x256xbf16>
    %c0_35 = arith.constant 0 : index
    %c0_36 = arith.constant 0 : index
    %c4_37 = arith.constant 4 : index
    %35 = vector.load %arg11[%c0_35, %c0_36, %c4_37] : memref<1x8x260xbf16, #tpu.memory_space<vmem>>, vector<1x8x256xbf16>
    %36 = vector.shape_cast %35 : vector<1x8x256xbf16> to vector<8x256xbf16>
    %37 = tpu.concatenate %32, %34, %36 in 0 : vector<8x256xbf16>, vector<8x256xbf16>, vector<8x256xbf16> -> vector<24x256xbf16>
    %cst_38 = arith.constant dense<0.000000e+00> : vector<8x256xf32>
    %38 = tpu.matmul %5, %37, %cst_38 {dimension_numbers = #tpu.dot_dimension_numbers<[1], [0], [0], [1], [0, 0, 1, 1], [], []>} : vector<8x24xbf16>, vector<24x256xbf16>, vector<8x256xf32> -> vector<8x256xf32>
    %39 = vector.broadcast %6 : vector<8x1xf32> to vector<8x256xf32>
    %40 = arith.addf %38, %39 : vector<8x256xf32>
    %cst_39 = arith.constant 0.000000e+00 : f32
    %41 = vector.broadcast %cst_39 : f32 to vector<8x256xf32>
    %42 = arith.maximumf %40, %41 : vector<8x256xf32>
    %cst_40 = arith.constant dense<0.000000e+00> : vector<8x256xf32>
    %43 = tpu.matmul %7, %11, %cst_40 {dimension_numbers = #tpu.dot_dimension_numbers<[1], [0], [0], [1], [0, 0, 1, 1], [], []>} : vector<8x4xbf16>, vector<4x256xbf16>, vector<8x256xf32> -> vector<8x256xf32>
    %44 = vector.broadcast %8 : vector<8x1xf32> to vector<8x256xf32>
    %45 = arith.addf %43, %44 : vector<8x256xf32>
    %46 = arith.addf %42, %45 : vector<8x256xf32>
    %cst_41 = arith.constant 0.000000e+00 : f32
    %47 = vector.broadcast %cst_41 : f32 to vector<8x256xf32>
    %48 = arith.maximumf %46, %47 : vector<8x256xf32>
    %c0_42 = arith.constant 0 : index
    %c0_43 = arith.constant 0 : index
    %c0_44 = arith.constant 0 : index
    %49 = vector.load %arg9[%c0_42, %c0_43, %c0_44] : memref<1x8x256xf32, #tpu.memory_space<vmem>>, vector<1x8x256xf32>
    %50 = vector.shape_cast %49 : vector<1x8x256xf32> to vector<8x256xf32>
    %51 = vector.shape_cast %48 : vector<8x256xf32> to vector<1x8x256xf32>
    tpu.vector_store %arg9[%c0_42, %c0_43, %c0_44], %51 {strides = array<i32>} : memref<1x8x256xf32, #tpu.memory_space<vmem>>, vector<1x8x256xf32>,
    return
  }
  func.func @transform_0(%arg0: i32, %arg1: i32) -> (i32, i32, i32) {
    %c0_i32 = arith.constant 0 : i32
    %c0_i32_0 = arith.constant 0 : i32
    return %arg0, %c0_i32, %arg1 : i32, i32, i32
  }
  func.func @transform_1(%arg0: i32, %arg1: i32) -> (i32, i32) {
    %c0_i32 = arith.constant 0 : i32
    %c0_i32_0 = arith.constant 0 : i32
    %c0_i32_1 = arith.constant 0 : i32
    return %c0_i32, %c0_i32_0 : i32, i32
  }
  func.func @transform_2(%arg0: i32, %arg1: i32) -> (i32, i32) {
    %c0_i32 = arith.constant 0 : i32
    %c0_i32_0 = arith.constant 0 : i32
    %c0_i32_1 = arith.constant 0 : i32
    return %c0_i32, %c0_i32_0 : i32, i32
  }
  func.func @transform_3(%arg0: i32, %arg1: i32) -> (i32, i32) {
    %c0_i32 = arith.constant 0 : i32
    %c0_i32_0 = arith.constant 0 : i32
    %c0_i32_1 = arith.constant 0 : i32
    return %c0_i32, %c0_i32_0 : i32, i32
  }
  func.func @transform_4(%arg0: i32, %arg1: i32) -> (i32, i32) {
    %c0_i32 = arith.constant 0 : i32
    %c0_i32_0 = arith.constant 0 : i32
    %c0_i32_1 = arith.constant 0 : i32
    return %c0_i32, %c0_i32_0 : i32, i32
  }
  func.func @transform_5(%arg0: i32, %arg1: i32) -> (i32, i32) {
    %c0_i32 = arith.constant 0 : i32
    %c0_i32_0 = arith.constant 0 : i32
    %c0_i32_1 = arith.constant 0 : i32
    return %c0_i32, %c0_i32_0 : i32, i32
  }
  func.func @transform_6(%arg0: i32, %arg1: i32) -> (i32, i32) {
    %c0_i32 = arith.constant 0 : i32
    %c0_i32_0 = arith.constant 0 : i32
    %c0_i32_1 = arith.constant 0 : i32
    return %c0_i32, %c0_i32_0 : i32, i32
  }
  func.func @transform_7(%arg0: i32, %arg1: i32) -> (i32, i32, i32) {
    %c0_i32 = arith.constant 0 : i32
    %c0_i32_0 = arith.constant 0 : i32
    return %arg0, %c0_i32, %arg1 : i32, i32, i32
  }
}

</mosaic_0001>

<bundles_post_ra>
// kernel: tpu_custom_call.1
= control target key start
LH: loop header
LB: loop body
LE: loop exit
PB: predicated region body
PF: predicated region fallthrough
CT: control target
= control target key end

     0   :  { %12 = vsyncpa [#allocation5], 0  ;;  %s1161_s0 = inlined_call_operand.vmem [shape: f32[2,4,256], index: 0, kind: input, shape index: {}]   ;;  %s1162_s1 = inlined_call_operand.vmem [shape: bf16[8,12], index: 1, kind: input, shape index: {}]   ;;  %s1163_s2 = inlined_call_operand.vmem [shape: f32[8,1], index: 2, kind: input, shape index: {}]   ;;  %s1164_s3 = inlined_call_operand.vmem [shape: bf16[8,24], index: 3, kind: input, shape index: {}]   ;;  %s1165_s4 = inlined_call_operand.vmem [shape: f32[8,1], index: 4, kind: input, shape index: {}]   ;;  %s1166_s5 = inlined_call_operand.vmem [shape: bf16[8,4], index: 5, kind: input, shape index: {}]   ;;  %s1167_s6 = inlined_call_operand.vmem [shape: f32[8,1], index: 6, kind: input, shape index: {}]   ;;  %s1168_s7 = inlined_call_operand.hbm [shape: f32[2,8,256], index: 7, kind: output, shape index: {}]  }
   0x1   :  { %14 = vsyncpa [#allocation5 + $0x1], 0  ;;  %s969_s24 = smov 0   ;;  %s971_s25 = smov 0  }
   0x2   :  { %s973_s26 = smov 0   ;;  %s975_s27 = smov 0  }
   0x3   :  { %s977_s28 = smov 0   ;;  %s979_s29 = smov 0  }
   0x4 LB: > { %s747_s30 = sadd.s32 4294967295, %s921_s29   ;;  %s748_s8 = sadd.s32 4294967294, %s921_s29   ;;  %s921_s29 = sphi %s979_s29, %s20_s29   ;;  %s917_s28 = sphi %s977_s28, %s1175_s28   ;;  %s913_s27 = sphi %s975_s27, %s1174_s27   ;;  %s909_s26 = sphi %s973_s26, %s1173_s26   ;;  %s905_s25 = sphi %s971_s25, %s1172_s25   ;;  %s901_s24 = sphi %s969_s24, %s1171_s24  }
   0x5   : > { %s32_s9 = sadd.s32 1, %s917_s28  ;;  %s195_s10 = sadd.s32 1, %s909_s26 }
   0x6   : > { %p34_p0 = scmp.ge.s32.totalorder %s32_s9, 2  ;;  %p205_p1 = scmp.ne.s32.totalorder %s909_s26, %s905_s25 }
   0x7   : > { %p206_p2 = scmp.eq.s32.totalorder %s747_s30, 1  ;;  %p211_p3 = scmp.ne.s32.totalorder %s905_s25, %s901_s24 }
   0x8   : > { %s1177_s9 = smov (%p34_p0, %s32_s9), 0  ;;  %p212_p5 = scmp.eq.s32.totalorder %s748_s8, 1 }
   0x9   : > { %p1009_p4 = por %p206_p2, %p205_p1  ;;  %s190_s12 = ssub.s32 %s917_s28, %s1177_s9 }
   0xa   : > { %p751_p6 = scmp.ge.s32.totalorder %s921_s29, 1  ;;  %p193_p7 = scmp.eq.s32.totalorder %s190_s12, 0 }
   0xb   : > { %p1016_p8 = por %p212_p5, %p211_p3  ;;  %p261_p9 = scmp.lt.s32.totalorder %s921_s29, 3 }
   0xc   : > { %s1022_s14 = scalar_select %p193_p7, %s909_s26, %s195_s10  }
   0xd   : > { %p262_p10 = pnand %p751_p6, %p261_p9 }
   0xe   : > { %p298_p11 = scmp.lt.s32.totalorder (!%p262_p10), %s913_s27, 1  ;;  %v340_v0 = vlaneseq (!%p262_p10)  ;;  %vm313_vm0 = vcmask (!%p262_p10), 1041408   ;;  %vm314_vm1 = vcmask (!%p262_p10), 1043458   ;;  %v923_v1 = vmov (!%p262_p10), 1983009808   ;;  %s925_s20 = smov (!%p262_p10), 4  }
   0xf   : > { %265 = sbr.rel (%p262_p10) target bundleno = 1002 (0x3ea), region = 48  ;;  %v338_v2 = vunpack.c.l.s4 (!%p262_p10), %v923_v1  ;;  %vm315_vm2 = vmor (!%p262_p10), %vm314_vm1, %vm313_vm0  ;;  %vm316_vm3 = vcmask (!%p262_p10), 29700   ;;  %vm350_vm5 = vcmask (!%p262_p10), 1041440   ;;  %v924_v3 = vmov (!%p262_p10), 0   ;;  %s926_s21 = smov (!%p262_p10), 126   ;;  %v323_v23 = vld [vmem:[%s1163_s2] sm:$0xff] (!%p262_p10) }
  0x10   : > { %vm317_vm4 = vmor (!%p262_p10), %vm316_vm3, %vm315_vm2  ;;  %319 = vst [vmem:[#allocation3] sm:$0xff] (!%p262_p10), %v924_v3  ;;  %470 = vmatprep.mubr.bf16.mxu0 (!%p262_p10), %v924_v3  ;;  %835 = vset.pattern.permute.xlu1 (!%p262_p10), %v924_v3  ;;  %v341_v5 = vshrl.u32 (!%p262_p10), %v340_v0, 7  ;;  %vm347_vm8 = vcmask (!%p262_p10), 31744   ;;  %s927_s22 = smov (!%p262_p10), 124   ;;  %vm390_vm9 = vcmask (!%p262_p10), 1031168   ;;  %vm409_vm10 = vcmask (!%p262_p10), 1014784  }
  0x11   : > { %v339_v4 = vunpack.c.0.s8 (!%p262_p10), %v338_v2  ;;  %318 = vst.msk [vmem:[#allocation2] sm:$0x3f] (!%p262_p10), %vm317_vm4, %v924_v3  ;;  %vm352_vm6 = vmor (!%p262_p10), %vm314_vm1, %vm350_vm5  ;;  %581 = vmatprep.mubr.bf16.mxu1 (!%p262_p10), %v924_v3  ;;  %836 = vset.pattern.permute.xlu0 (!%p262_p10), %v924_v3  ;;  %vm419_vm11 = vcmask (!%p262_p10), 1043456   ;;  %vm433_vm12 = vcmask (!%p262_p10), 1045504   ;;  %v322_v41 = vld [vmem:[%s1162_s1] sm:$0xf] (!%p262_p10) }
  0x12   : > { %vm354_vm7 = vmor (!%p262_p10), %vm316_vm3, %vm352_vm6  ;;  %vm429_vm13 = vcmask (!%p262_p10), 97280   ;;  %vm320_vm14 = vcmask (!%p262_p10), 27648   ;;  %vm494_vm15 = vcmask (!%p262_p10), 1043488   ;;  %vm495_vm1 = vcmask (!%p262_p10), 1047556   ;;  %v326_v60 = vld [vmem:[%s1166_s5] sm:$0xf] (!%p262_p10) }
  0x13   : > { %v342_v8 = vsub.s32 (!%p262_p10), %v339_v4, %v341_v5  ;;  %321 = vst.msk [vmem:[#allocation3 + $0x8] sm:$0xf] (!%p262_p10), %vm320_vm14, %v924_v3  ;;  %vm496_vm2 = vmor (!%p262_p10), %vm495_vm1, %vm494_vm15  ;;  %v325_v63 = vld [vmem:[%s1165_s4] sm:$0xff] (!%p262_p10)  ;;  %s774_s30 = sshll.u32 (!%p262_p10), %s913_s27, 8 }
  0x14   : > { %v327_v0 = vld [vmem:[%s1167_s6] sm:$0xff] (!%p262_p10) }
  0x16   : > { %s299_s15 = scalar_select %p298_p11, %s913_s27, 1 }
  0x17   : > { %s928_s27 = smov [#allocation4]  }
  0x18   : > { %s772_s16 = sshll.u32 %s299_s15, 3 }
  0x19   : > { %s305_s19 = scalar_lea.vmem %s1161_s0, %s772_s16  ;;  %s1114_s16 = scalar_lea.hbm %s1168_s7, %s774_s30 }
  0x1a   : > { %v1040_v6 = vld [vmem:[%s305_s19] sm:$0xff]  ;;  %s847_s19 = sshll.u32 %s928_s27, 4  ;;  %s848_s19 = int_to_ptr.vmem [resolvable:$false] %s847_s19 }
  0x1b   : > { %v1044_v7 = vcombine.high %v1040_v6, %v1040_v6  ;;  %v332_v56 = vpack.c.bf16 %v1040_v6, %v1040_v6 }
  0x1d   : > { %v755_v9 = vpack.c.bf16 %v1044_v7, %v1040_v6  ;;  %v333_v55 = vpack.c.bf16 %v1044_v7, %v1044_v7  ;;  %v602_v57 = vsel %vm313_vm0, %v332_v56, 0 }
  0x1f   : > { %v343_v10 = vrot.slane %v755_v9, %v342_v8 }
  0x21   : > { %344 = vrot.lane.b32.xlu0 %v343_v10, %s925_s20 }
  0x93   : > { %v345_v11 = vpop.permute.xlu0 %344 }
  0x94   : > { %v346_v12 = vrot.slane %v345_v11, 6 }
  0x96   : > { %v348_v13 = vsel %vm347_vm8, %v346_v12, %v345_v11 }
  0x97   : > { %355 = vst.msk [vmem:[#allocation2] sm:$0x3f] %vm354_vm7, %v348_v13 }
  0x9e   : > { %v357_v14 = vld [vmem:[#allocation2] sm:$0x3f] }
  0x9f   : > { %v382_v15 = vrot.slane %v357_v14, %v342_v8  ;;  %v368_v16 = vcombine.low %v357_v14, %v357_v14  ;;  %v393_v18 = vcombine.high %v357_v14, %v357_v14  ;;  %v756_v29 = vld.sshfl [vmem:[#allocation2] sm:$0x33 pattern:$0x76325410] }
  0xa0   : > { %v366_v33 = vcombine.high %v756_v29, %v756_v29  ;;  %v324_v14 = vld [vmem:[%s1164_s3] sm:$0xf] }
  0xa1   : > { %388 = vrot.lane.b32.xlu1 %v382_v15, %s926_s21  ;;  %v375_v17 = vrot.slane %v368_v16, %v342_v8  ;;  %v401_v20 = vcombine.low %v382_v15, %v382_v15  ;;  %v400_v21 = vrot.slane %v393_v18, %v342_v8 }
  0xa3   : > { %384 = vrot.lane.b32.xlu0 %v375_v17, %s926_s21  ;;  %v383_v19 = vcombine.high %v375_v17, %v375_v17  ;;  %v402_v22 = vcombine.low %v400_v21, %v400_v21 }
  0xa5   : > { %386 = vrot.lane.b32.xlu1 %v383_v19, %s926_s21 }
  0xa7   : > { %403 = vrot.lane.b32.xlu0 %v401_v20, %s927_s22 }
  0xa9   : > { %405 = vrot.lane.b32.xlu1 %v382_v15, %s927_s22 }
  0xab   : > { %407 = vrot.lane.b32.xlu0 %v402_v22, %s927_s22 }
  0xad   : > { %426 = vperm.xlu1 %835, %v323_v23  }
 0x113   : > { %v389_v24 = vpop.permute.xlu1 %388 }
 0x115   : > { %v385_v25 = vpop.permute.xlu0 %384 }
 0x117   : > { %v387_v26 = vpop.permute.xlu1 %386 }
 0x118   : > { %v391_v27 = vsel %vm390_vm9, %v385_v25, %v387_v26  ;;  %v392_v30 = vsel %vm390_vm9, %v387_v26, %v389_v24 }
 0x119   : > { %v404_v28 = vpop.permute.xlu0 %403  ;;  %v415_v34 = vsel %vm313_vm0, %v756_v29, %v391_v27  ;;  %v418_v38 = vsel %vm313_vm0, %v366_v33, %v392_v30 }
 0x11b   : > { %v406_v31 = vpop.permute.xlu1 %405 }
 0x11c   : > { %v410_v32 = vsel %vm409_vm10, %v404_v28, %v406_v31 }
 0x11d   : > { %v408_v35 = vpop.permute.xlu0 %407  ;;  %v421_v36 = vsel %vm419_vm11, %v415_v34, %v410_v32 }
 0x11e   : > { %v411_v37 = vsel %vm409_vm10, %v406_v31, %v408_v35  ;;  %v434_v40 = vsel %vm433_vm12, %v421_v36, 0 }
 0x11f   : > { %v423_v39 = vsel %vm419_vm11, %v418_v38, %v411_v37 }
 0x120   : > { %757 = vmatprep.subr.msk.bf16.mxu0 %vm433_vm12, %v423_v39 }
 0x121   : > { %439 = vmatpush1.bf16.msra.mxu0 %v434_v40 }
 0x122   : > { %765 = vmatprep.subr.msk.bf16.mxu0 %vm313_vm0, %v333_v55  ;;  %vm539_vm0 = vcmask 195584  }
 0x124   : > { %758 = vmatmul.mubr.msk.bf16.vlgmr.msra.gmra.mrb[0].mxu0 %vm429_vm13, %v322_v41 }
 0x125   : > { %639 = vmatprep.mubr.bf16.mxu0 %v924_v3  ;;  %608 = vmatpush1.bf16.msra.mxu0 %v602_v57 }
 0x12c   : > { %v427_v42 = vpop.permute.xlu1 %426  ;;  %766 = vmatmul.mubr.msk.bf16.vlgmr.msra.gmra.mrb[4].mxu0 %vm347_vm8, %v326_v60 }
 0x1f7   : > { %v472_v43 = vpop.f32.mrb[0].mxu0 }
 0x1f8   : > { %v473_v44 = vadd.f32 %v472_v43, %v427_v42  ;;  %v474_v45 = vpop.f32.mrb[1].mxu0 }
 0x1f9   : > { %v475_v46 = vadd.f32 %v474_v45, %v427_v42  ;;  %v476_v47 = vpop.f32.mrb[2].mxu0 }
 0x1fa   : > { %v479_v48 = vmax.f32 %v473_v44, 0.0  ;;  %v477_v49 = vpop.f32.mrb[3].mxu0 }
 0x1fb   : > { %v480_v50 = vmax.f32 %v475_v46, 0.0 }
 0x1fd   : > { %v773_v51 = vpack.c.bf16 %v480_v50, %v479_v48 }
 0x1ff   : > { %488 = vrot.lane.b32.xlu0 %v773_v51, %s925_s20  ;;  %v641_v15 = vpop.f32.mrb[4].mxu0  ;;  %s849_s20 = scalar_lea.vmem %s848_s19, 512 }
 0x200   : > { %v643_v16 = vpop.f32.mrb[5].mxu0 }
 0x201   : > { %v645_v17 = vpop.f32.mrb[6].mxu0 }
 0x202   : > { %v646_v18 = vpop.f32.mrb[7].mxu0 }
 0x271   : > { %v489_v52 = vpop.permute.xlu0 %488 }
 0x272   : > { %v490_v53 = vrot.slane %v489_v52, 4 }
 0x274   : > { %v491_v54 = vsel %vm347_vm8, %v490_v53, %v489_v52  ;;  %499 = vst.msk [vmem:[#allocation3 + $0x8] sm:$0xf] %vm320_vm14, %v490_v53 }
 0x275   : > { %497 = vst.msk [vmem:[#allocation3] sm:$0xff] %vm496_vm2, %v491_v54 }
 0x27b   : > { %v840_v58 = vld [vmem:[#allocation3 + $0x8] ss:$0 sps:$4 sm:$0xff]  }
 0x27c   : > { %v500_v59 = vld [vmem:[#allocation3] sm:$0xff]  ;;  %514 = vrot.lane.b32.xlu0 %v840_v58, %s926_s21 }
 0x27d   : > { %v761_v61 = vcombine.high %v500_v59, %v500_v59  ;;  %v760_v62 = vcombine.low %v500_v59, %v500_v59 }
 0x27f   : > { %512 = vrot.lane.b32.xlu1 %v761_v61, %s926_s21 }
 0x280   : > { %518 = vrot.lane.b32.xlu0 %v760_v62, %s927_s22 }
 0x283   : > { %510 = vrot.lane.b32.xlu1 %v760_v62, %s926_s21 }
 0x284   : > { %522 = vrot.lane.b32.xlu0 %v840_v58, %s927_s22 }
 0x287   : > { %520 = vrot.lane.b32.xlu1 %v761_v61, %s927_s22  ;;  %s294_s22 = sand.u32 1, %s905_s25  }
 0x288   : > { %594 = vperm.xlu0 %836, %v327_v0   ;;  %s752_s23 = sshll.u32 %s294_s22, 4  ;;  %s655_s17 = scalar_lea.sflag [#allocation5], %s294_s22 }
 0x289   : > { %s296_s8 = scalar_lea.vmem [#allocation4], %s752_s23 }
 0x28a   : > { %s671_s10 = sshll.u32 %s296_s8, 4  ;;  %s1116_s10 = int_to_ptr.vmem [resolvable:$true] %s671_s10 }
 0x28b   : > { %536 = vperm.xlu1 %835, %v325_v63   ;;  %s843_s18 = scalar_lea.vmem %s1116_s10, 256  ;;  %p850_p1 = scmp.lt.s32.totalorder %s1116_s10, %s848_s19 }
 0x28c   : > { %p844_p12 = scmp.ne.s32.totalorder %s1116_s10, %s843_s18  ;;  %p851_p2 = scmp.lt.s32.totalorder %s849_s20, %s843_s18 }
 0x28e   : > { %p845_p13 = pnand %p844_p12, %p1009_p4  ;;  %p852_p3 = por %p851_p2, %p850_p1 }
 0x290   : > { %p846_p0 = pneg %p845_p13 }
 0x292   : > { %p853_p5 = pnand %p852_p3, %p846_p0 }
 0x2ee   : > { %v515_v1 = vpop.permute.xlu0 %514 }
 0x2f1   : > { %v513_v2 = vpop.permute.xlu1 %512 }
 0x2f2   : > { %v517_v3 = vsel %vm390_vm9, %v513_v2, %v515_v1  ;;  %v519_v5 = vpop.permute.xlu0 %518 }
 0x2f3   : > { %v532_v4 = vsel %vm419_vm11, %v761_v61, %v517_v3 }
 0x2f4   : > { %549 = vmatprep.subr.bf16.mxu1 %v532_v4 }
 0x2f5   : > { %v511_v6 = vpop.permute.xlu1 %510 }
 0x2f6   : > { %v516_v7 = vsel %vm390_vm9, %v511_v6, %v513_v2  ;;  %v523_v9 = vpop.permute.xlu0 %522 }
 0x2f7   : > { %v528_v8 = vsel %vm419_vm11, %v760_v62, %v516_v7 }
 0x2f8   : > { %550 = vmatpush1.bf16.msra.mxu1 %v528_v8 }
 0x2f9   : > { %v521_v10 = vpop.permute.xlu1 %520 }
 0x2fa   : > { %v524_v11 = vsel %vm409_vm10, %v519_v5, %v521_v10  ;;  %v525_v12 = vsel %vm409_vm10, %v521_v10, %v523_v9 }
 0x2fb   : > { %763 = vmatprep.subr.msk.bf16.mxu1 %vm419_vm11, %v525_v12  ;;  %v544_v13 = vsel %vm419_vm11, %v524_v11, 0 }
 0x2fc   : > { %552 = vmatpush1.bf16.msra.mxu1 %v544_v13 }
 0x2ff   : > { %764 = vmatmul.mubr.msk.bf16.vlgmr.msra.gmra.mrb[0].mxu1 %vm539_vm0, %v324_v14 }
 0x307   : > { %v595_v19 = vpop.permute.xlu0 %594 }
 0x308   : > { %v642_v24 = vadd.f32 %v641_v15, %v595_v19  ;;  %v644_v26 = vadd.f32 %v643_v16, %v595_v19 }
 0x30a   : > { %v537_v20 = vpop.permute.xlu1 %536 }
 0x3d2   : > { %v583_v21 = vpop.f32.mrb[0].mxu1 }
 0x3d3   : > { %v584_v22 = vadd.f32 %v583_v21, %v537_v20  ;;  %v585_v23 = vpop.f32.mrb[1].mxu1 }
 0x3d4   : > { %v586_v25 = vadd.f32 %v585_v23, %v537_v20  ;;  %v587_v27 = vpop.f32.mrb[2].mxu1 }
 0x3d5   : > { %v590_v28 = vmax.f32 %v584_v22, 0.0  ;;  %v588_v29 = vpop.f32.mrb[3].mxu1 }
 0x3d6   : > { %v591_v30 = vmax.f32 %v586_v25, 0.0 }
 0x3d7   : > { %v648_v31 = vadd.f32 %v642_v24, %v590_v28 }
 0x3d8   : > { %v649_v32 = vadd.f32 %v644_v26, %v591_v30 }
 0x3d9   : > { %v650_v33 = vmax.f32 %v648_v31, 0.0 }
 0x3da   : > { %v651_v34 = vmax.f32 %v649_v32, 0.0 }
 0x3db   : > { %652 = vst [vmem:[%s296_s8] sm:$0xff] %v650_v33 }
 0x3dc   : > { %653 = vst [vmem:[%s296_s8 + $0x8] sm:$0xff] %v651_v34 }
 0x3dd   : > { %856 = shalt.err (!%p853_p5)
}
 0x3de   : > { %s857_s21 = scalar_lea.hbm %s1114_s16, 256  ;;  %s861_s30 = scalar_lea.hbm %s1168_s7, 512 }
 0x3df   : > { %p858_p6 = scmp.ne.s32.totalorder %s1114_s16, %s857_s21  ;;  %p862_p10 = scmp.lt.u32.totalorder %s1114_s16, %s1168_s7 }
 0x3e0   : > { %p863_p11 = scmp.lt.u32.totalorder %s861_s30, %s857_s21  ;;  %p865_p13 = scmp.lt.u32.totalorder %s857_s21, %s1114_s16 }
 0x3e1   : > { %p859_p7 = pnand %p858_p6, %p1009_p4 }
 0x3e2   : > { %p864_p12 = por %p863_p11, %p862_p10 }
 0x3e3   : > { %p860_p9 = pneg %p859_p7 }
 0x3e4   : > { %p866_p0 = por %p865_p13, %p864_p12 }
 0x3e6   : > { %p867_p1 = pnand %p866_p0, %p860_p9 }
 0x3e8   : > { %870 = shalt.err (!%p867_p1)
}
 0x3e9   : > { %775 = dma.vmem_to_hbm [thread:$0]  (%p1009_p4), %s1116_s10, 256, %s1114_s16, %s655_s17  }
 0x3ea PF: > { %p781_p2 = scmp.ge.s32.totalorder %s921_s29, 2  ;;  %s683_s15 = sand.u32 1, %s901_s24  }
 0x3eb   : > { %s684_s18 = scalar_lea.sflag [#allocation5], %s683_s15 }
 0x3ec   : > { %p778_p3 = pnand %p781_p2, %p1016_p8 }
 0x3ee   : > { %896 = dma.done.wait (!%p778_p3), %s684_s18, 256  }
 0x3ef   : > { %898 = vsyncadd (!%p778_p3), %s684_s18, 4294967040  ;;  %s20_s29 = sadd.s32 1, %s921_s29   ;;  %s1171_s24 = smov %s905_s25 }
 0x3f0   : > { %p17_p5 = scmp.ge.s32.totalorder %s20_s29, 4   ;;  %s1172_s25 = smov %s909_s26 }
 0x3f1   : > { %s1173_s26 = smov %s1022_s14  ;;  %s1174_s27 = smov %s917_s28 }
 0x3f2   : > { %s1175_s28 = smov %s1177_s9  ;;  %19 = sbr.rel (!%p17_p5) target bundleno = 4 (0x4), region = 87 }
 0x3f9   :  { %689 = vsyncpa [#allocation5], 1 }
 0x3fa   :  { %691 = vsyncpa [#allocation5 + $0x1], 1 }

</bundles_post_ra>
